<compile_context>
chip_gen: v5e
topology: v5e:2x2
jax: 0.10.0
libtpu: 0.0.40
codegen_flags: <defaults>
</compile_context>

<pallas_src>
import jax
import jax.numpy as jnp
from jax.experimental import pallas as pl
from jax.experimental.pallas import tpu as pltpu

BN_EPS = 1e-5


def _gfe_kernel(x_ref, w1_ref, w2f_ref, w4f_ref, wse1_ref, wse2_ref, wpost_ref,
                vec_ref, bpost_ref, o_ref):
    """Fused GlobalFeatureExtractorModule forward for one batch tile.

    x_ref   : (bt, D, T)     bf16  flattened (channel*freq, time) input tile
    w1_ref  : (H, D)         bf16  conv1d_seq[0] weight (columns permuted to (c,f))
    w2f_ref : (H, H)         bf16  conv1d_seq[1] weight with BN1 scale folded in
    w4f_ref : (H, H)         bf16  SE pre_conv weight with res2net-BN scale folded in
    wse1/2  : (H, H)         bf16  SE 1x1 conv weights
    wpost   : (Cout, H)      bf16  post_conv weight
    vec_ref : (H, 8)         f32   packed columns [c2, s2, t2, c4, s4, t4, bse1, bse2]
    bpost   : (Cout, 1)      f32   post_conv bias
    o_ref   : (bt, Cout, T)  bf16 (or requested out dtype)
    """
    bt, _, T = x_ref.shape
    H = w1_ref.shape[0]
    cdt = w1_ref.dtype                          # matmul operand dtype (bf16)

    # Hoisted single loads of every weight tile.
    w1 = w1_ref[...]
    w2f = w2f_ref[...]
    w4f = w4f_ref[...]
    wse1 = wse1_ref[...]
    wse2 = wse2_ref[...]
    wpost = wpost_ref[...]
    bpost = bpost_ref[...]

    c2 = vec_ref[:, 0:1]
    s2 = vec_ref[:, 1:2]
    t2 = vec_ref[:, 2:3]
    c4 = vec_ref[:, 3:4]
    s4 = vec_ref[:, 4:5]
    t4 = vec_ref[:, 5:6]
    bse1 = vec_ref[:, 6:7]
    bse2 = vec_ref[:, 7:8]

    # Flatten the batch tile into the lane axis: every stage becomes ONE matmul with
    # N = bt*T instead of bt tiny matmuls (fills the MXU, weights pushed once).
    if bt == 1:
        xw = x_ref[0]                                                 # (D, T)
    else:
        xw = jnp.concatenate([x_ref[b] for b in range(bt)], axis=1)   # (D, bt*T)

    h1 = jnp.maximum(jnp.dot(w1, xw, preferred_element_type=jnp.float32), 0.0)
    h2 = jnp.maximum(
        jnp.dot(w2f, h1.astype(cdt), preferred_element_type=jnp.float32) + c2, 0.0)
    h3 = jnp.maximum(h2 * s2 + t2, 0.0)                  # BN2 + res2net ReLU
    h4 = jnp.maximum(
        jnp.dot(w4f, h3.astype(cdt), preferred_element_type=jnp.float32) + c4, 0.0)
    h5 = h4 * s4 + t4                                    # SE pre_conv BN output (H, bt*T)

    # --- squeeze-excite gate: per-batch temporal means from static lane-aligned slices.
    # TODO(synk): optional SE mask path ((x*m).sum / m.sum) is not implemented.
    means = jnp.concatenate(
        [jnp.mean(h5[:, b * T:(b + 1) * T], axis=1, keepdims=True) for b in range(bt)],
        axis=1)                                          # (H, bt) f32

    u = jnp.maximum(
        jnp.dot(wse1, means.astype(cdt), preferred_element_type=jnp.float32) + bse1, 0.0)
    gate = jax.nn.sigmoid(
        jnp.dot(wse2, u.astype(cdt), preferred_element_type=jnp.float32) + bse2)  # (H, bt)

    gate_full = jnp.concatenate(
        [jnp.broadcast_to(gate[:, b:b + 1], (H, T)) for b in range(bt)], axis=1)

    # --- channel gate + post_conv + ReLU, one matmul for the whole batch tile.
    y = jnp.dot(wpost, (h5 * gate_full).astype(cdt),
                preferred_element_type=jnp.float32) + bpost
    y = jnp.maximum(y, 0.0).astype(o_ref.dtype)          # (Cout, bt*T)

    for b in range(bt):                                  # lane-dense (Cout, T) stores
        o_ref[b] = y[:, b * T:(b + 1) * T]


def _bn_scale_shift(g, b, m, v, eps=BN_EPS):
    s = g * jax.lax.rsqrt(v + eps)
    return s, b - m * s


def fold_params(raw, *, in_channels, freq_bins, compute_dtype=jnp.bfloat16):
    """Precompute the fused / folded parameter set consumed by the kernel.

    TODO(synk): training-mode BatchNorm batch statistics are not modeled; eval-mode
    running stats are folded into per-channel scale/shift.
    """
    H, D = raw["conv1_w"].shape
    assert D == in_channels * freq_bins
    c_out = raw["post_w"].shape[0]

    s1, t1 = _bn_scale_shift(raw["bn1_g"], raw["bn1_b"], raw["bn1_m"], raw["bn1_v"])
    s2, t2 = _bn_scale_shift(raw["bn2_g"], raw["bn2_b"], raw["bn2_m"], raw["bn2_v"])
    s3, t3 = _bn_scale_shift(raw["res2_bn_g"], raw["res2_bn_b"],
                             raw["res2_bn_m"], raw["res2_bn_v"])
    s4, t4 = _bn_scale_shift(raw["se_bn_g"], raw["se_bn_b"],
                             raw["se_bn_m"], raw["se_bn_v"])

    # Fold the reference's permute(0,2,1,3)+flatten into W1's columns: the kernel input
    # is the free (B, C*F, T) reshape (channel-major), so remap W1 columns (f,c)->(c,f).
    w1 = raw["conv1_w"].reshape(H, freq_bins, in_channels)
    w1 = jnp.transpose(w1, (0, 2, 1)).reshape(H, D)

    # Exact affine folds: BN1 into conv2, res2net BN into the SE pre_conv.
    w2f = raw["conv2_w"] * s1[None, :]
    c2 = raw["conv2_w"] @ t1
    w4f = raw["se_conv_w"] * s3[None, :]
    c4 = raw["se_conv_w"] @ t3

    vec = jnp.stack([c2, s2, t2, c4, s4, t4, raw["se_b1"], raw["se_b2"]],
                    axis=1).astype(jnp.float32)                # (H, 8)

    return {
        "w1": w1.astype(compute_dtype),
        "w2f": w2f.astype(compute_dtype),
        "w4f": w4f.astype(compute_dtype),
        "wse1": raw["se_w1"].astype(compute_dtype),
        "wse2": raw["se_w2"].astype(compute_dtype),
        "wpost": raw["post_w"].astype(compute_dtype),
        "vec": vec,
        "bpost": raw["post_b"].reshape(c_out, 1).astype(jnp.float32),
    }


def _tensorcores_per_device():
    """Megacore heuristic: v4 / v5p / v7x expose 2 TensorCores per JAX device."""
    try:
        kind = jax.devices()[0].device_kind.lower()
    except Exception:  # pragma: no cover - defensive
        return 1
    return 2 if any(tag in kind for tag in ("v4", "v5p", "v7")) else 1


def _default_batch_tile(batch, n_cores):
    if batch <= 1:
        return max(batch, 1)
    if n_cores <= 1:
        return batch                          # single grid step: no megacore to feed
    if batch % n_cores == 0:
        return batch // n_cores               # exactly n_cores equal parallel steps
    for cand in range(max(batch // n_cores, 1), 0, -1):
        if batch % cand == 0:
            return cand
    return 1


def _vmem_limit_bytes(bt, D, T, H, c_out, in_bytes=2, out_bytes=2):
    n = bt * T
    io = 2 * (bt * D * T * in_bytes + bt * c_out * T * out_bytes)   # double-buffered
    weights = 2 * ((H * D + 3 * H * H + c_out * H) * in_bytes + (H * 8 + c_out) * 4)
    temps = 4 * H * n * 4 + c_out * n * 4          # live f32 intermediates (upper bound)
    est = int(1.5 * (io + weights + temps)) + (4 << 20)
    return int(min(max(est, 32 << 20), 64 << 20))


def global_feature_extractor(x, raw_params, *, batch_tile=None,
                             compute_dtype=jnp.bfloat16, out_dtype=jnp.bfloat16):
    """x: (B, C, F, T) float32 -> (B, C_out, T) out_dtype (eval-mode forward)."""
    B, Cin, F, T = x.shape
    D = Cin * F
    p = fold_params(raw_params, in_channels=Cin, freq_bins=F,
                    compute_dtype=compute_dtype)
    H = p["w1"].shape[0]
    Cout = p["wpost"].shape[0]

    # Free reshape (no HBM transpose); the (f,c)->(c,f) permute lives in W1's columns.
    x2 = x.reshape(B, D, T).astype(compute_dtype)

    n_cores = _tensorcores_per_device()
    bt = _default_batch_tile(B, n_cores) if batch_tile is None else batch_tile
    assert B % bt == 0, f"batch {B} must be divisible by batch tile {bt}"
    grid = (B // bt,)

    def const_spec(shape):
        return pl.BlockSpec(shape, lambda i: (0,) * len(shape))

    # NOTE: constant weight blocks are tiny at these sizes; at production sizes consider
    # single-buffering them (Buffered(1)) to leave VMEM for larger bt*T tiles.
    # TODO(synk): for very large T, add an "arbitrary" T-tile grid axis with a two-phase
    # SE-mean accumulator (needed on v7x where physical VMEM is 64 MiB).
    return pl.pallas_call(
        _gfe_kernel,
        out_shape=jax.ShapeDtypeStruct((B, Cout, T), out_dtype),
        grid_spec=pltpu.PrefetchScalarGridSpec(
            num_scalar_prefetch=0,
            grid=grid,
            in_specs=[
                pl.BlockSpec((bt, D, T), lambda i: (i, 0, 0)),   # x tile
                const_spec((H, D)),        # w1
                const_spec((H, H)),        # w2f (BN1 folded)
                const_spec((H, H)),        # w4f (res2net BN folded)
                const_spec((H, H)),        # wse1
                const_spec((H, H)),        # wse2
                const_spec((Cout, H)),     # wpost
                const_spec((H, 8)),        # packed per-channel vectors
                const_spec((Cout, 1)),     # post_conv bias
            ],
            out_specs=pl.BlockSpec((bt, Cout, T), lambda i: (i, 0, 0)),
            scratch_shapes=[],
        ),
        compiler_params=pltpu.CompilerParams(
            dimension_semantics=("parallel",),
            vmem_limit_bytes=_vmem_limit_bytes(bt, D, T, H, Cout)),
    )(x2, p["w1"], p["w2f"], p["w4f"], p["wse1"], p["wse2"], p["wpost"],
      p["vec"], p["bpost"])


def init_params(key, in_channels, hidden, out_channels, freq_bins):
    """Random eval-mode parameters in the PyTorch layout (k=1 kernel dims squeezed).

    The Res2ConvNetModule conv_list weights are omitted on purpose: the reference
    forward discards that branch (`spo` is never used), so they cannot affect output.
    """
    D = in_channels * freq_bins
    keys = iter(jax.random.split(key, 32))
    f32 = jnp.float32

    def rnd(shape, scale=0.1):
        return scale * jax.random.normal(next(keys), shape, f32)

    def bn(prefix, c):
        return {
            prefix + "_g": 1.0 + 0.1 * jax.random.normal(next(keys), (c,), f32),
            prefix + "_b": rnd((c,)),
            prefix + "_m": rnd((c,)),
            prefix + "_v": 0.5 + 0.5 * jnp.abs(jax.random.normal(next(keys), (c,), f32)),
        }

    p = {
        "conv1_w": rnd((hidden, D)),
        "conv2_w": rnd((hidden, hidden)),
        "se_conv_w": rnd((hidden, hidden)),
        "se_w1": rnd((hidden, hidden)), "se_b1": rnd((hidden,)),
        "se_w2": rnd((hidden, hidden)), "se_b2": rnd((hidden,)),
        "post_w": rnd((out_channels, hidden)), "post_b": rnd((out_channels,)),
    }
    for prefix in ("bn1", "bn2", "res2_bn", "se_bn"):
        p.update(bn(prefix, hidden))
    return p


def _reference(x, raw, eps=BN_EPS):
    """Pure-JAX f32 reference mirroring the PyTorch forward (eval mode, m=None)."""
    B, Cin, F, T = x.shape
    h = jnp.transpose(x, (0, 2, 1, 3)).reshape(B, F * Cin, T)

    def bn(y, prefix):
        g, b, m, v = (raw[prefix + s] for s in ("_g", "_b", "_m", "_v"))
        return ((y - m[None, :, None]) * jax.lax.rsqrt(v[None, :, None] + eps)
                * g[None, :, None] + b[None, :, None])

    def conv1x1(y, w, bias=None):
        o = jnp.einsum("oc,bct->bot", w, y)
        return o if bias is None else o + bias[None, :, None]

    relu = lambda y: jnp.maximum(y, 0.0)

    h = bn(relu(conv1x1(h, raw["conv1_w"])), "bn1")        # conv1d_seq[0]
    h = bn(relu(conv1x1(h, raw["conv2_w"])), "bn2")        # conv1d_seq[1]
    h = bn(relu(h), "res2_bn")                             # Res2ConvNetModule output
    h = bn(relu(conv1x1(h, raw["se_conv_w"])), "se_bn")    # SE pre_conv
    w = jnp.mean(h, axis=2, keepdims=True)
    w = relu(conv1x1(w, raw["se_w1"], raw["se_b1"]))
    w = jax.nn.sigmoid(conv1x1(w, raw["se_w2"], raw["se_b2"]))
    h = h * w
    return relu(conv1x1(h, raw["post_w"], raw["post_b"]))  # post_conv + ReLU


if __name__ == "__main__":
    B, C_IN, FREQ, T = 2, 2, 16, 128
    HIDDEN, C_OUT = 32, 64

    key = jax.random.PRNGKey(0)
    k_param, k_x = jax.random.split(key)
    raw = init_params(k_param, C_IN, HIDDEN, C_OUT, FREQ)
    x = jax.random.normal(k_x, (B, C_IN, FREQ, T), jnp.float32)

    out = global_feature_extractor(x, raw)                    # generation-aware default
    out_b1 = global_feature_extractor(x, raw, batch_tile=1)   # 2 parallel grid steps
    out_b2 = global_feature_extractor(x, raw, batch_tile=2)   # single step, lanes = B*T
    jax.block_until_ready((out, out_b1, out_b2))
    assert out.shape == (B, C_OUT, T)

    ref = _reference(x, raw)
    for got in (out, out_b1, out_b2):
        g = got.astype(jnp.float32)
        err = float(jnp.max(jnp.abs(g - ref)))
        assert bool(jnp.allclose(g, ref, rtol=1e-1, atol=5e-2)), f"max abs err {err}"
    print("KERNEL_OK")
</pallas_src>

<mosaic_0001>
module attributes {stable_mosaic.version = 11 : i64} {
  func.func @_gfe_kernel(%arg0: i32, %arg1: memref<2x32x128xbf16, #tpu.memory_space<vmem>>, %arg2: memref<32x32xbf16, #tpu.memory_space<vmem>>, %arg3: memref<32x32xbf16, #tpu.memory_space<vmem>>, %arg4: memref<32x32xbf16, #tpu.memory_space<vmem>>, %arg5: memref<32x32xbf16, #tpu.memory_space<vmem>>, %arg6: memref<32x32xbf16, #tpu.memory_space<vmem>>, %arg7: memref<64x32xbf16, #tpu.memory_space<vmem>>, %arg8: memref<32x8xf32, #tpu.memory_space<vmem>>, %arg9: memref<64x1xf32, #tpu.memory_space<vmem>>, %arg10: memref<2x64x128xbf16, #tpu.memory_space<vmem>>) attributes {dimension_semantics = [#tpu.dimension_semantics<parallel>], iteration_bounds = array<i64: 1>, scalar_prefetch = 0 : i64, scratch_operands = 0 : i64, tpu.core_type = #tpu.core_type<tc>, window_params = [{transform_indices = @transform_0, window_bounds = array<i64: 2, 32, 128>}, {pipeline_mode = #tpu.pipeline_mode<synchronous>, transform_indices = @transform_1, window_bounds = array<i64: 32, 32>}, {pipeline_mode = #tpu.pipeline_mode<synchronous>, transform_indices = @transform_2, window_bounds = array<i64: 32, 32>}, {pipeline_mode = #tpu.pipeline_mode<synchronous>, transform_indices = @transform_3, window_bounds = array<i64: 32, 32>}, {pipeline_mode = #tpu.pipeline_mode<synchronous>, transform_indices = @transform_4, window_bounds = array<i64: 32, 32>}, {pipeline_mode = #tpu.pipeline_mode<synchronous>, transform_indices = @transform_5, window_bounds = array<i64: 32, 32>}, {pipeline_mode = #tpu.pipeline_mode<synchronous>, transform_indices = @transform_6, window_bounds = array<i64: 64, 32>}, {pipeline_mode = #tpu.pipeline_mode<synchronous>, transform_indices = @transform_7, window_bounds = array<i64: 32, 8>}, {pipeline_mode = #tpu.pipeline_mode<synchronous>, transform_indices = @transform_8, window_bounds = array<i64: 64, 1>}, {transform_indices = @transform_9, window_bounds = array<i64: 2, 64, 128>}]} {
    %c0 = arith.constant 0 : index
    %c0_0 = arith.constant 0 : index
    %0 = vector.load %arg2[%c0, %c0_0] : memref<32x32xbf16, #tpu.memory_space<vmem>>, vector<32x32xbf16>
    %c0_1 = arith.constant 0 : index
    %c0_2 = arith.constant 0 : index
    %1 = vector.load %arg3[%c0_1, %c0_2] : memref<32x32xbf16, #tpu.memory_space<vmem>>, vector<32x32xbf16>
    %c0_3 = arith.constant 0 : index
    %c0_4 = arith.constant 0 : index
    %2 = vector.load %arg4[%c0_3, %c0_4] : memref<32x32xbf16, #tpu.memory_space<vmem>>, vector<32x32xbf16>
    %c0_5 = arith.constant 0 : index
    %c0_6 = arith.constant 0 : index
    %3 = vector.load %arg5[%c0_5, %c0_6] : memref<32x32xbf16, #tpu.memory_space<vmem>>, vector<32x32xbf16>
    %c0_7 = arith.constant 0 : index
    %c0_8 = arith.constant 0 : index
    %4 = vector.load %arg6[%c0_7, %c0_8] : memref<32x32xbf16, #tpu.memory_space<vmem>>, vector<32x32xbf16>
    %c0_9 = arith.constant 0 : index
    %c0_10 = arith.constant 0 : index
    %5 = vector.load %arg7[%c0_9, %c0_10] : memref<64x32xbf16, #tpu.memory_space<vmem>>, vector<64x32xbf16>
    %c0_11 = arith.constant 0 : index
    %c0_12 = arith.constant 0 : index
    %6 = vector.load %arg9[%c0_11, %c0_12] : memref<64x1xf32, #tpu.memory_space<vmem>>, vector<64x1xf32>
    %c0_13 = arith.constant 0 : index
    %c0_14 = arith.constant 0 : index
    %7 = vector.load %arg8[%c0_13, %c0_14] : memref<32x8xf32, #tpu.memory_space<vmem>>, vector<32x1xf32>
    %c0_15 = arith.constant 0 : index
    %c1 = arith.constant 1 : index
    %8 = vector.load %arg8[%c0_15, %c1] : memref<32x8xf32, #tpu.memory_space<vmem>>, vector<32x1xf32>
    %c0_16 = arith.constant 0 : index
    %c2 = arith.constant 2 : index
    %9 = vector.load %arg8[%c0_16, %c2] : memref<32x8xf32, #tpu.memory_space<vmem>>, vector<32x1xf32>
    %c0_17 = arith.constant 0 : index
    %c3 = arith.constant 3 : index
    %10 = vector.load %arg8[%c0_17, %c3] : memref<32x8xf32, #tpu.memory_space<vmem>>, vector<32x1xf32>
    %c0_18 = arith.constant 0 : index
    %c4 = arith.constant 4 : index
    %11 = vector.load %arg8[%c0_18, %c4] : memref<32x8xf32, #tpu.memory_space<vmem>>, vector<32x1xf32>
    %c0_19 = arith.constant 0 : index
    %c5 = arith.constant 5 : index
    %12 = vector.load %arg8[%c0_19, %c5] : memref<32x8xf32, #tpu.memory_space<vmem>>, vector<32x1xf32>
    %c0_20 = arith.constant 0 : index
    %c6 = arith.constant 6 : index
    %13 = vector.load %arg8[%c0_20, %c6] : memref<32x8xf32, #tpu.memory_space<vmem>>, vector<32x1xf32>
    %c0_21 = arith.constant 0 : index
    %c7 = arith.constant 7 : index
    %14 = vector.load %arg8[%c0_21, %c7] : memref<32x8xf32, #tpu.memory_space<vmem>>, vector<32x1xf32>
    %c0_22 = arith.constant 0 : index
    %c0_23 = arith.constant 0 : index
    %c0_24 = arith.constant 0 : index
    %15 = vector.load %arg1[%c0_22, %c0_23, %c0_24] : memref<2x32x128xbf16, #tpu.memory_space<vmem>>, vector<1x32x128xbf16>
    %16 = vector.shape_cast %15 : vector<1x32x128xbf16> to vector<32x128xbf16>
    %c1_25 = arith.constant 1 : index
    %c0_26 = arith.constant 0 : index
    %c0_27 = arith.constant 0 : index
    %17 = vector.load %arg1[%c1_25, %c0_26, %c0_27] : memref<2x32x128xbf16, #tpu.memory_space<vmem>>, vector<1x32x128xbf16>
    %18 = vector.shape_cast %17 : vector<1x32x128xbf16> to vector<32x128xbf16>
    %19 = tpu.concatenate %16, %18 in 1 : vector<32x128xbf16>, vector<32x128xbf16> -> vector<32x256xbf16>
    %cst = arith.constant dense<0.000000e+00> : vector<32x256xf32>
    %20 = tpu.matmul %0, %19, %cst {dimension_numbers = #tpu.dot_dimension_numbers<[1], [0], [0], [1], [0, 0, 1, 1], [], []>} : vector<32x32xbf16>, vector<32x256xbf16>, vector<32x256xf32> -> vector<32x256xf32>
    %cst_28 = arith.constant 0.000000e+00 : f32
    %21 = vector.broadcast %cst_28 : f32 to vector<32x256xf32>
    %22 = arith.maximumf %20, %21 : vector<32x256xf32>
    %23 = arith.truncf %22 : vector<32x256xf32> to vector<32x256xbf16>
    %cst_29 = arith.constant dense<0.000000e+00> : vector<32x256xf32>
    %24 = tpu.matmul %1, %23, %cst_29 {dimension_numbers = #tpu.dot_dimension_numbers<[1], [0], [0], [1], [0, 0, 1, 1], [], []>} : vector<32x32xbf16>, vector<32x256xbf16>, vector<32x256xf32> -> vector<32x256xf32>
    %25 = vector.broadcast %7 : vector<32x1xf32> to vector<32x256xf32>
    %26 = arith.addf %24, %25 : vector<32x256xf32>
    %cst_30 = arith.constant 0.000000e+00 : f32
    %27 = vector.broadcast %cst_30 : f32 to vector<32x256xf32>
    %28 = arith.maximumf %26, %27 : vector<32x256xf32>
    %29 = vector.broadcast %8 : vector<32x1xf32> to vector<32x256xf32>
    %30 = arith.mulf %28, %29 : vector<32x256xf32>
    %31 = vector.broadcast %9 : vector<32x1xf32> to vector<32x256xf32>
    %32 = arith.addf %30, %31 : vector<32x256xf32>
    %cst_31 = arith.constant 0.000000e+00 : f32
    %33 = vector.broadcast %cst_31 : f32 to vector<32x256xf32>
    %34 = arith.maximumf %32, %33 : vector<32x256xf32>
    %35 = arith.truncf %34 : vector<32x256xf32> to vector<32x256xbf16>
    %cst_32 = arith.constant dense<0.000000e+00> : vector<32x256xf32>
    %36 = tpu.matmul %2, %35, %cst_32 {dimension_numbers = #tpu.dot_dimension_numbers<[1], [0], [0], [1], [0, 0, 1, 1], [], []>} : vector<32x32xbf16>, vector<32x256xbf16>, vector<32x256xf32> -> vector<32x256xf32>
    %37 = vector.broadcast %10 : vector<32x1xf32> to vector<32x256xf32>
    %38 = arith.addf %36, %37 : vector<32x256xf32>
    %cst_33 = arith.constant 0.000000e+00 : f32
    %39 = vector.broadcast %cst_33 : f32 to vector<32x256xf32>
    %40 = arith.maximumf %38, %39 : vector<32x256xf32>
    %41 = vector.broadcast %11 : vector<32x1xf32> to vector<32x256xf32>
    %42 = arith.mulf %40, %41 : vector<32x256xf32>
    %43 = vector.broadcast %12 : vector<32x1xf32> to vector<32x256xf32>
    %44 = arith.addf %42, %43 : vector<32x256xf32>
    %45 = vector.extract_strided_slice %44 {offsets = [0, 0], sizes = [32, 128], strides = [1, 1]} : vector<32x256xf32> to vector<32x128xf32>
    %cst_34 = arith.constant dense<0.000000e+00> : vector<32xf32>
    %46 = vector.multi_reduction <add>, %45, %cst_34 [1] : vector<32x128xf32> to vector<32xf32>
    %47 = vector.shape_cast %46 : vector<32xf32> to vector<32x1xf32>
    %cst_35 = arith.constant 1.280000e+02 : f32
    %48 = vector.broadcast %cst_35 : f32 to vector<32x1xf32>
    %49 = arith.divf %47, %48 : vector<32x1xf32>
    %50 = vector.extract_strided_slice %44 {offsets = [0, 128], sizes = [32, 128], strides = [1, 1]} : vector<32x256xf32> to vector<32x128xf32>
    %cst_36 = arith.constant dense<0.000000e+00> : vector<32xf32>
    %51 = vector.multi_reduction <add>, %50, %cst_36 [1] : vector<32x128xf32> to vector<32xf32>
    %52 = vector.shape_cast %51 : vector<32xf32> to vector<32x1xf32>
    %cst_37 = arith.constant 1.280000e+02 : f32
    %53 = vector.broadcast %cst_37 : f32 to vector<32x1xf32>
    %54 = arith.divf %52, %53 : vector<32x1xf32>
    %55 = tpu.concatenate %49, %54 in 1 : vector<32x1xf32>, vector<32x1xf32> -> vector<32x2xf32>
    %56 = arith.truncf %55 : vector<32x2xf32> to vector<32x2xbf16>
    %cst_38 = arith.constant dense<0.000000e+00> : vector<32x2xf32>
    %57 = tpu.matmul %3, %56, %cst_38 {dimension_numbers = #tpu.dot_dimension_numbers<[1], [0], [0], [1], [0, 0, 1, 1], [], []>} : vector<32x32xbf16>, vector<32x2xbf16>, vector<32x2xf32> -> vector<32x2xf32>
    %58 = vector.broadcast %13 : vector<32x1xf32> to vector<32x2xf32>
    %59 = arith.addf %57, %58 : vector<32x2xf32>
    %cst_39 = arith.constant 0.000000e+00 : f32
    %60 = vector.broadcast %cst_39 : f32 to vector<32x2xf32>
    %61 = arith.maximumf %59, %60 : vector<32x2xf32>
    %62 = arith.truncf %61 : vector<32x2xf32> to vector<32x2xbf16>
    %cst_40 = arith.constant dense<0.000000e+00> : vector<32x2xf32>
    %63 = tpu.matmul %4, %62, %cst_40 {dimension_numbers = #tpu.dot_dimension_numbers<[1], [0], [0], [1], [0, 0, 1, 1], [], []>} : vector<32x32xbf16>, vector<32x2xbf16>, vector<32x2xf32> -> vector<32x2xf32>
    %64 = vector.broadcast %14 : vector<32x1xf32> to vector<32x2xf32>
    %65 = arith.addf %63, %64 : vector<32x2xf32>
    %66 = arith.negf %65 : vector<32x2xf32>
    %67 = math.exp %66 : vector<32x2xf32>
    %cst_41 = arith.constant 1.000000e+00 : f32
    %68 = vector.broadcast %cst_41 : f32 to vector<32x2xf32>
    %69 = arith.addf %68, %67 : vector<32x2xf32>
    %70 = arith.divf %68, %69 : vector<32x2xf32>
    %71 = vector.extract_strided_slice %70 {offsets = [0, 0], sizes = [32, 1], strides = [1, 1]} : vector<32x2xf32> to vector<32x1xf32>
    %72 = vector.shape_cast %71 : vector<32x1xf32> to vector<32x1xf32>
    %73 = vector.broadcast %72 : vector<32x1xf32> to vector<32x128xf32>
    %74 = vector.extract_strided_slice %70 {offsets = [0, 1], sizes = [32, 1], strides = [1, 1]} : vector<32x2xf32> to vector<32x1xf32>
    %75 = vector.shape_cast %74 : vector<32x1xf32> to vector<32x1xf32>
    %76 = vector.broadcast %75 : vector<32x1xf32> to vector<32x128xf32>
    %77 = tpu.concatenate %73, %76 in 1 : vector<32x128xf32>, vector<32x128xf32> -> vector<32x256xf32>
    %78 = arith.mulf %44, %77 : vector<32x256xf32>
    %79 = arith.truncf %78 : vector<32x256xf32> to vector<32x256xbf16>
    %cst_42 = arith.constant dense<0.000000e+00> : vector<64x256xf32>
    %80 = tpu.matmul %5, %79, %cst_42 {dimension_numbers = #tpu.dot_dimension_numbers<[1], [0], [0], [1], [0, 0, 1, 1], [], []>} : vector<64x32xbf16>, vector<32x256xbf16>, vector<64x256xf32> -> vector<64x256xf32>
    %81 = vector.broadcast %6 : vector<64x1xf32> to vector<64x256xf32>
    %82 = arith.addf %80, %81 : vector<64x256xf32>
    %cst_43 = arith.constant 0.000000e+00 : f32
    %83 = vector.broadcast %cst_43 : f32 to vector<64x256xf32>
    %84 = arith.maximumf %82, %83 : vector<64x256xf32>
    %85 = arith.truncf %84 : vector<64x256xf32> to vector<64x256xbf16>
    %86 = vector.extract_strided_slice %85 {offsets = [0, 0], sizes = [64, 128], strides = [1, 1]} : vector<64x256xbf16> to vector<64x128xbf16>
    %c0_44 = arith.constant 0 : index
    %c0_45 = arith.constant 0 : index
    %c0_46 = arith.constant 0 : index
    %87 = vector.load %arg10[%c0_44, %c0_45, %c0_46] : memref<2x64x128xbf16, #tpu.memory_space<vmem>>, vector<1x64x128xbf16>
    %88 = vector.shape_cast %87 : vector<1x64x128xbf16> to vector<64x128xbf16>
    %89 = vector.shape_cast %86 : vector<64x128xbf16> to vector<1x64x128xbf16>
    tpu.vector_store %arg10[%c0_44, %c0_45, %c0_46], %89 {strides = array<i32>} : memref<2x64x128xbf16, #tpu.memory_space<vmem>>, vector<1x64x128xbf16>,
    %90 = vector.extract_strided_slice %85 {offsets = [0, 128], sizes = [64, 128], strides = [1, 1]} : vector<64x256xbf16> to vector<64x128xbf16>
    %c1_47 = arith.constant 1 : index
    %c0_48 = arith.constant 0 : index
    %c0_49 = arith.constant 0 : index
    %91 = vector.load %arg10[%c1_47, %c0_48, %c0_49] : memref<2x64x128xbf16, #tpu.memory_space<vmem>>, vector<1x64x128xbf16>
    %92 = vector.shape_cast %91 : vector<1x64x128xbf16> to vector<64x128xbf16>
    %93 = vector.shape_cast %90 : vector<64x128xbf16> to vector<1x64x128xbf16>
    tpu.vector_store %arg10[%c1_47, %c0_48, %c0_49], %93 {strides = array<i32>} : memref<2x64x128xbf16, #tpu.memory_space<vmem>>, vector<1x64x128xbf16>,
    return
  }
  func.func @transform_0(%arg0: i32) -> (i32, i32, i32) {
    %c0_i32 = arith.constant 0 : i32
    %c0_i32_0 = arith.constant 0 : i32
    %c0_i32_1 = arith.constant 0 : i32
    return %arg0, %c0_i32, %c0_i32_0 : i32, i32, i32
  }
  func.func @transform_1(%arg0: i32) -> (i32, i32) {
    %c0_i32 = arith.constant 0 : i32
    %c0_i32_0 = arith.constant 0 : i32
    %c0_i32_1 = arith.constant 0 : i32
    return %c0_i32, %c0_i32_0 : i32, i32
  }
  func.func @transform_2(%arg0: i32) -> (i32, i32) {
    %c0_i32 = arith.constant 0 : i32
    %c0_i32_0 = arith.constant 0 : i32
    %c0_i32_1 = arith.constant 0 : i32
    return %c0_i32, %c0_i32_0 : i32, i32
  }
  func.func @transform_3(%arg0: i32) -> (i32, i32) {
    %c0_i32 = arith.constant 0 : i32
    %c0_i32_0 = arith.constant 0 : i32
    %c0_i32_1 = arith.constant 0 : i32
    return %c0_i32, %c0_i32_0 : i32, i32
  }
  func.func @transform_4(%arg0: i32) -> (i32, i32) {
    %c0_i32 = arith.constant 0 : i32
    %c0_i32_0 = arith.constant 0 : i32
    %c0_i32_1 = arith.constant 0 : i32
    return %c0_i32, %c0_i32_0 : i32, i32
  }
  func.func @transform_5(%arg0: i32) -> (i32, i32) {
    %c0_i32 = arith.constant 0 : i32
    %c0_i32_0 = arith.constant 0 : i32
    %c0_i32_1 = arith.constant 0 : i32
    return %c0_i32, %c0_i32_0 : i32, i32
  }
  func.func @transform_6(%arg0: i32) -> (i32, i32) {
    %c0_i32 = arith.constant 0 : i32
    %c0_i32_0 = arith.constant 0 : i32
    %c0_i32_1 = arith.constant 0 : i32
    return %c0_i32, %c0_i32_0 : i32, i32
  }
  func.func @transform_7(%arg0: i32) -> (i32, i32) {
    %c0_i32 = arith.constant 0 : i32
    %c0_i32_0 = arith.constant 0 : i32
    %c0_i32_1 = arith.constant 0 : i32
    return %c0_i32, %c0_i32_0 : i32, i32
  }
  func.func @transform_8(%arg0: i32) -> (i32, i32) {
    %c0_i32 = arith.constant 0 : i32
    %c0_i32_0 = arith.constant 0 : i32
    %c0_i32_1 = arith.constant 0 : i32
    return %c0_i32, %c0_i32_0 : i32, i32
  }
  func.func @transform_9(%arg0: i32) -> (i32, i32, i32) {
    %c0_i32 = arith.constant 0 : i32
    %c0_i32_0 = arith.constant 0 : i32
    %c0_i32_1 = arith.constant 0 : i32
    return %arg0, %c0_i32, %c0_i32_0 : i32, i32, i32
  }
}

</mosaic_0001>

<bundles_post_ra>
// kernel: tpu_custom_call.1
= control target key start
LH: loop header
LB: loop body
LE: loop exit
PB: predicated region body
PF: predicated region fallthrough
CT: control target
= control target key end

     0   :  { %s1432_s0 = inlined_call_operand.vmem [shape: bf16[2,32,128], index: 0, kind: input, shape index: {}]   ;;  %s1433_s1 = inlined_call_operand.vmem [shape: bf16[32,32], index: 1, kind: input, shape index: {}]   ;;  %s1434_s2 = inlined_call_operand.vmem [shape: bf16[32,32], index: 2, kind: input, shape index: {}]   ;;  %s1435_s3 = inlined_call_operand.vmem [shape: bf16[32,32], index: 3, kind: input, shape index: {}]   ;;  %s1436_s4 = inlined_call_operand.vmem [shape: bf16[32,32], index: 4, kind: input, shape index: {}]   ;;  %s1437_s5 = inlined_call_operand.vmem [shape: bf16[32,32], index: 5, kind: input, shape index: {}]   ;;  %s1438_s6 = inlined_call_operand.vmem [shape: bf16[64,32], index: 6, kind: input, shape index: {}]   ;;  %s1439_s7 = inlined_call_operand.vmem [shape: f32[32,8], index: 7, kind: input, shape index: {}]   ;;  %s1440_s8 = inlined_call_operand.vmem [shape: f32[64,1], index: 8, kind: input, shape index: {}]   ;;  %s1441_s9 = inlined_call_operand.hbm [shape: bf16[2,64,128], index: 9, kind: output, shape index: {}]  }
   0x1   :  { %v1044_v0 = vld [vmem:[%s1432_s0 + $0x8] sm:$0xff]  ;;  %v1046_v1 = vld [vmem:[%s1432_s0 + $0x18] sm:$0xff]  ;;  %v1043_v2 = vld [vmem:[%s1432_s0] sm:$0xff] }
   0x2   :  { %130 = vmatpush.bf16.msra.mxu2 %v1044_v0  ;;  %149 = vmatpush.bf16.msra.mxu3 %v1046_v1  ;;  %v1045_v3 = vld [vmem:[%s1432_s0 + $0x10] sm:$0xff] }
   0x3   :  { %14 = vsyncpa [#allocation3], 0  ;;  %v1029_v4 = vld [vmem:[%s1433_s1] sm:$0xff]  ;;  %vm117_vm0 = vcmask 261120   ;;  %v1030_v5 = vld [vmem:[%s1433_s1 + $0x8] sm:$0xff]  ;;  %v1157_v10 = vmov 0  }
   0x4   :  { %v1244_v8 = vld [vmem:[%s1439_s7] sm:$0xff]  ;;  %v1249_v9 = vld [vmem:[%s1439_s7 + $0x10] sm:$0xff]  ;;  %1083 = vset.pattern.permute.xlu1 %v1157_v10  ;;  %1082 = vset.pattern.permute.xlu0 %v1157_v10  ;;  %v1258_v13 = vld [vmem:[%s1439_s7 + $0x8] sm:$0xff]  ;;  %v1158_v17 = vmov 1   ;;  %v1159_v18 = vmov 2   ;;  %v1160_v36 = vmov 3  }
   0x5   :  { %176 = vperm.xlu1 %1083, %v1244_v8   ;;  %186 = vperm.xlu0 %1082, %v1249_v9   ;;  %v1263_v14 = vld [vmem:[%s1439_s7 + $0x18] sm:$0xff]  ;;  %v1031_v33 = vld [vmem:[%s1434_s2] sm:$0xff]  ;;  %v1032_v34 = vld [vmem:[%s1434_s2 + $0x8] sm:$0xff]  ;;  %v1161_v46 = vmov 4   ;;  %v1162_v48 = vmov 5   ;;  %vm473_vm2 = vcmask 7168  }
   0x6   :  { %131 = vmatpush.bf16.msra.mxu2 %v1043_v2  ;;  %150 = vmatpush.bf16.msra.mxu3 %v1045_v3  ;;  %s913_s16 = sshll.u32 %s1441_s9, 4  ;;  %s1167_s17 = smov 64   ;;  %s914_s16 = int_to_ptr.hbm [resolvable:$true] %s913_s16 }
   0x7   :  { %1084 = vset.pattern.permute.xlu2 %v1158_v17 }
   0x8   :  { %265 = vperm.xlu2 %1084, %v1249_v9  }
   0x9   :  { %953 = vmatmul.msk.bf16.vlgmr.msra.gmra.mxu2 %vm117_vm0, %v1029_v4  ;;  %955 = vmatmul.msk.bf16.vlgmr.msra.gmra.mxu3 %vm117_vm0, %v1029_v4 }
   0xd   :  { %181 = vperm.xlu1 %1083, %v1258_v13   ;;  %191 = vperm.xlu0 %1082, %v1263_v14  }
  0x10   :  { %269 = vperm.xlu2 %1084, %v1263_v14  }
  0x15   :  { %1086 = vset.pattern.permute.xlu1 %v1159_v18  ;;  %1085 = vset.pattern.permute.xlu0 %v1159_v18 }
  0x16   :  { %293 = vperm.xlu1 %1086, %v1263_v14   ;;  %289 = vperm.xlu0 %1085, %v1249_v9  }
  0x18   :  { %257 = vperm.xlu2 %1084, %v1244_v8  }
  0x19   :  { %954 = vmatmul.msk.bf16.gmra.mxu2 %vm117_vm0, %v1030_v5  ;;  %956 = vmatmul.msk.bf16.gmra.mxu3 %vm117_vm0, %v1030_v5 }
  0x1e   :  { %1087 = vset.pattern.permute.xlu1 %v1158_v17  ;;  %285 = vperm.xlu0 %1085, %v1258_v13  }
  0x1f   :  { %261 = vperm.xlu1 %1087, %v1258_v13  }
  0x20   :  { %1088 = vset.pattern.permute.xlu2 %v1159_v18 }
  0x21   :  { %281 = vperm.xlu2 %1088, %v1244_v8  }
  0x26   :  { %1091 = vset.pattern.permute.xlu0 %v1160_v36 }
  0x27   :  { %1089 = vset.pattern.permute.xlu1 %v1160_v36  ;;  %317 = vperm.xlu0 %1091, %v1244_v8  }
  0x28   :  { %325 = vperm.xlu1 %1089, %v1249_v9  }
  0x29   :  { %1090 = vset.pattern.permute.xlu2 %v1160_v36 }
  0x2a   :  { %329 = vperm.xlu2 %1090, %v1263_v14  }
  0x2f   :  { %1095 = vset.pattern.permute.xlu0 %v1162_v48 }
  0x30   :  { %321 = vperm.xlu1 %1089, %v1258_v13   ;;  %431 = vperm.xlu0 %1095, %v1263_v14  }
  0x32   :  { %1092 = vset.pattern.permute.xlu2 %v1161_v46 }
  0x33   :  { %403 = vperm.xlu2 %1092, %v1249_v9  }
  0x38   :  { %1093 = vset.pattern.permute.xlu1 %v1161_v46 }
  0x39   :  { %407 = vperm.xlu1 %1093, %v1263_v14  }
  0x3b   :  { %1094 = vset.pattern.permute.xlu2 %v1162_v48 }
  0x3c   :  { %427 = vperm.xlu2 %1094, %v1249_v9  }
  0x41   :  { %395 = vperm.xlu1 %1093, %v1244_v8  }
  0x44   :  { %1096 = vset.pattern.permute.xlu2 %v1161_v46 }
  0x45   :  { %399 = vperm.xlu2 %1096, %v1258_v13  }
  0x49   :  { %1097 = vset.pattern.permute.xlu1 %v1162_v48 }
  0x4a   :  { %419 = vperm.xlu1 %1097, %v1244_v8  }
  0x4d   :  { %1098 = vset.pattern.permute.xlu2 %v1162_v48 }
  0x4e   :  { %423 = vperm.xlu2 %1098, %v1258_v13  }
  0x62   :  { %v266_v38 = vpop.permute.xlu2 %265 }
  0x6a   :  { %v270_v45 = vpop.permute.xlu2 %269 }
  0x72   :  { %v258_v54 = vpop.permute.xlu2 %257 }
  0x77   :  { %v177_v35 = vpop.permute.xlu1 %176  ;;  %v187_v37 = vpop.permute.xlu0 %186 }
  0x7f   :  { %v182_v41 = vpop.permute.xlu1 %181  ;;  %v192_v42 = vpop.permute.xlu0 %191 }
  0x88   :  { %v294_v47 = vpop.permute.xlu1 %293  ;;  %v290_v53 = vpop.permute.xlu0 %289 }
  0x8c   :  { %v133_v6 = vpop.f32.mrf.mxu2  ;;  %v152_v7 = vpop.f32.mrf.mxu3 }
  0x8d   :  { %v162_v29 = vmax.f32 %v133_v6, 0.0  ;;  %v163_v30 = vmax.f32 %v152_v7, 0.0 }
  0x91   :  { %v262_v63 = vpop.permute.xlu1 %261 }
  0x94   :  { %v135_v11 = vpop.f32.mrf.mxu2  ;;  %v154_v12 = vpop.f32.mrf.mxu3 }
  0x95   :  { %v164_v25 = vmax.f32 %v135_v11, 0.0  ;;  %v165_v26 = vmax.f32 %v154_v12, 0.0 }
  0x97   :  { %v170_v31 = vpack.c.bf16 %v164_v25, %v162_v29  ;;  %v171_v32 = vpack.c.bf16 %v165_v26, %v163_v30 }
  0x9a   :  { %v326_v46 = vpop.permute.xlu1 %325 }
  0x9c   :  { %v138_v15 = vpop.f32.mrf.mxu2  ;;  %v157_v16 = vpop.f32.mrf.mxu3 }
  0x9d   :  { %v166_v21 = vmax.f32 %v138_v15, 0.0  ;;  %v167_v22 = vmax.f32 %v157_v16, 0.0 }
  0xa4   :  { %v140_v19 = vpop.f32.mrf.mxu2  ;;  %v159_v20 = vpop.f32.mrf.mxu3 }
  0xa5   :  { %v168_v23 = vmax.f32 %v140_v19, 0.0  ;;  %v169_v24 = vmax.f32 %v159_v20, 0.0  ;;  %v286_v20 = vpop.permute.xlu0 %285 }
  0xa7   :  { %v172_v27 = vpack.c.bf16 %v168_v23, %v166_v21  ;;  %v173_v28 = vpack.c.bf16 %v169_v24, %v167_v22  ;;  %v282_v22 = vpop.permute.xlu2 %281 }
  0xa9   :  { %216 = vmatpush.bf16.msrb.mxu2 %v172_v27  ;;  %235 = vmatpush.bf16.msrb.mxu3 %v173_v28 }
  0xad   :  { %217 = vmatpush.bf16.msrb.mxu2 %v170_v31  ;;  %236 = vmatpush.bf16.msrb.mxu3 %v171_v32 }
  0xb0   :  { %965 = vmatmul.msk.bf16.vlgmr.msrb.gmra.mxu2 %vm117_vm0, %v1031_v33  ;;  %967 = vmatmul.msk.bf16.vlgmr.msrb.gmra.mxu3 %vm117_vm0, %v1031_v33 }
  0xc0   :  { %966 = vmatmul.msk.bf16.gmra.mxu2 %vm117_vm0, %v1032_v34  ;;  %968 = vmatmul.msk.bf16.gmra.mxu3 %vm117_vm0, %v1032_v34 }
 0x133   :  { %v219_v39 = vpop.f32.mrf.mxu2  ;;  %v238_v40 = vpop.f32.mrf.mxu3 }
 0x134   :  { %v220_v57 = vadd.f32 %v219_v39, %v177_v35  ;;  %v239_v58 = vadd.f32 %v238_v40, %v177_v35 }
 0x136   :  { %v248_v0 = vmax.f32 %v220_v57, 0.0  ;;  %v249_v1 = vmax.f32 %v239_v58, 0.0 }
 0x138   :  { %v272_v18 = vmul.f32 %v258_v54, %v248_v0  ;;  %v273_v19 = vmul.f32 %v258_v54, %v249_v1 }
 0x13a   :  { %v296_v30 = vadd.f32 %v282_v22, %v272_v18  ;;  %v297_v31 = vadd.f32 %v282_v22, %v273_v19 }
 0x13b   :  { %v221_v43 = vpop.f32.mrf.mxu2  ;;  %v240_v44 = vpop.f32.mrf.mxu3 }
 0x13c   :  { %v222_v55 = vadd.f32 %v221_v43, %v182_v41  ;;  %v241_v56 = vadd.f32 %v240_v44, %v182_v41  ;;  %v304_v40 = vmax.f32 %v296_v30, 0.0  ;;  %v305_v41 = vmax.f32 %v297_v31, 0.0  ;;  %v1033_v44 = vld [vmem:[%s1435_s3] sm:$0xff] }
 0x13e   :  { %v250_v61 = vmax.f32 %v222_v55, 0.0  ;;  %v251_v62 = vmax.f32 %v241_v56, 0.0 }
 0x140   :  { %v274_v11 = vmul.f32 %v262_v63, %v250_v61  ;;  %v275_v12 = vmul.f32 %v262_v63, %v251_v62 }
 0x142   :  { %v298_v26 = vadd.f32 %v286_v20, %v274_v11  ;;  %v299_v27 = vadd.f32 %v286_v20, %v275_v12 }
 0x143   :  { %v224_v49 = vpop.f32.mrf.mxu2  ;;  %v243_v50 = vpop.f32.mrf.mxu3 }
 0x144   :  { %v225_v51 = vadd.f32 %v224_v49, %v187_v37  ;;  %v244_v52 = vadd.f32 %v243_v50, %v187_v37  ;;  %v306_v36 = vmax.f32 %v298_v26, 0.0  ;;  %v307_v37 = vmax.f32 %v299_v27, 0.0  ;;  %v330_v49 = vpop.permute.xlu2 %329 }
 0x146   :  { %v252_v59 = vmax.f32 %v225_v51, 0.0  ;;  %v253_v60 = vmax.f32 %v244_v52, 0.0  ;;  %v313_v43 = vpack.c.bf16 %v307_v37, %v305_v41  ;;  %v318_v51 = vpop.permute.xlu0 %317 }
 0x148   :  { %v276_v2 = vmul.f32 %v266_v38, %v252_v59  ;;  %v277_v5 = vmul.f32 %v266_v38, %v253_v60 }
 0x14a   :  { %v300_v21 = vadd.f32 %v290_v53, %v276_v2  ;;  %v301_v25 = vadd.f32 %v290_v53, %v277_v5 }
 0x14b   :  { %v226_v3 = vpop.f32.mrf.mxu2  ;;  %v245_v4 = vpop.f32.mrf.mxu3 }
 0x14c   :  { %v227_v6 = vadd.f32 %v226_v3, %v192_v42  ;;  %v246_v7 = vadd.f32 %v245_v4, %v192_v42  ;;  %v308_v32 = vmax.f32 %v300_v21, 0.0  ;;  %v309_v34 = vmax.f32 %v301_v25, 0.0  ;;  %v404_v52 = vpop.permute.xlu2 %403 }
 0x14d   :  { %v312_v42 = vpack.c.bf16 %v306_v36, %v304_v40  ;;  %v1163_v40 = vmov 128.0  }
 0x14e   :  { %v254_v15 = vmax.f32 %v227_v6, 0.0  ;;  %v255_v16 = vmax.f32 %v246_v7, 0.0  ;;  %v432_v27 = vpop.permute.xlu0 %431  ;;  %1113 = vrcp.f32 %v1163_v40 }
 0x150   :  { %v278_v23 = vmul.f32 %v270_v45, %v254_v15  ;;  %v279_v24 = vmul.f32 %v270_v45, %v255_v16  ;;  %v1034_v45 = vld [vmem:[%s1435_s3 + $0x8] sm:$0xff] }
 0x152   :  { %v302_v28 = vadd.f32 %v294_v47, %v278_v23  ;;  %v303_v29 = vadd.f32 %v294_v47, %v279_v24  ;;  %v322_v47 = vpop.permute.xlu1 %321 }
 0x154   :  { %v310_v33 = vmax.f32 %v302_v28, 0.0  ;;  %v311_v35 = vmax.f32 %v303_v29, 0.0  ;;  %v428_v62 = vpop.permute.xlu2 %427  ;;  %v1114_v41 = vpop.eup %1113 }
 0x155   :  { %vm455_vm1 = vweird.f32 %v1114_v41 }
 0x156   :  { %v314_v38 = vpack.c.bf16 %v310_v33, %v308_v32  ;;  %v315_v39 = vpack.c.bf16 %v311_v35, %v309_v34 }
 0x158   :  { %354 = vmatpush.bf16.msra.mxu0 %v314_v38  ;;  %373 = vmatpush.bf16.msra.mxu1 %v315_v39 }
 0x15a   :  { %v408_v48 = vpop.permute.xlu1 %407 }
 0x15c   :  { %355 = vmatpush.bf16.msra.mxu0 %v312_v42  ;;  %374 = vmatpush.bf16.msra.mxu1 %v313_v43  ;;  %v400_v3 = vpop.permute.xlu2 %399  ;;  %v451_v42 = vmul.f32 128.0, %v1114_v41 }
 0x15e   :  { %v452_v43 = vsub.f32 1.0, %v451_v42 }
 0x15f   :  { %977 = vmatmul.msk.bf16.vlgmr.msra.gmra.mxu0 %vm117_vm0, %v1033_v44  ;;  %979 = vmatmul.msk.bf16.vlgmr.msra.gmra.mxu1 %vm117_vm0, %v1033_v44  ;;  %v1164_v44 = vmov 6  }
 0x160   :  { %1101 = vset.pattern.permute.xlu0 %v1164_v44  ;;  %1099 = vset.pattern.permute.xlu1 %v1164_v44 }
 0x161   :  { %1100 = vset.pattern.permute.xlu2 %v1164_v44 }
 0x162   :  { %v396_v50 = vpop.permute.xlu1 %395 }
 0x164   :  { %v424_v28 = vpop.permute.xlu2 %423 }
 0x16a   :  { %v420_v57 = vpop.permute.xlu1 %419 }
 0x16f   :  { %978 = vmatmul.msk.bf16.gmra.mxu0 %vm117_vm0, %v1034_v45  ;;  %980 = vmatmul.msk.bf16.gmra.mxu1 %vm117_vm0, %v1034_v45 }
 0x1dc   :  { %v357_v53 = vpop.f32.mrf.mxu0  ;;  %v376_v54 = vpop.f32.mrf.mxu1 }
 0x1dd   :  { %v358_v55 = vadd.f32 %v357_v53, %v318_v51  ;;  %v377_v22 = vadd.f32 %v376_v54, %v318_v51 }
 0x1df   :  { %v386_v56 = vmax.f32 %v358_v55, 0.0  ;;  %v387_v31 = vmax.f32 %v377_v22, 0.0 }
 0x1e1   :  { %v410_v58 = vmul.f32 %v396_v50, %v386_v56  ;;  %v411_v36 = vmul.f32 %v396_v50, %v387_v31 }
 0x1e3   :  { %v1309_v59 = vadd.f32 %v420_v57, %v410_v58  ;;  %v1327_v38 = vadd.f32 %v420_v57, %v411_v36  ;;  %v1038_v36 = vld [vmem:[%s1437_s5 + $0x8] sm:$0xff] }
 0x1e4   :  { %v359_v60 = vpop.f32.mrf.mxu0  ;;  %v378_v61 = vpop.f32.mrf.mxu1 }
 0x1e5   :  { %442 = vadd.xlane.f32.xlu0 %v1309_v59  ;;  %v379_v6 = vadd.f32 %v378_v61, %v322_v47  ;;  %v360_v23 = vadd.f32 %v359_v60, %v322_v47 }
 0x1e7   :  { %v389_v16 = vmax.f32 %v379_v6, 0.0  ;;  %v388_v32 = vmax.f32 %v360_v23, 0.0 }
 0x1e9   :  { %v413_v26 = vmul.f32 %v400_v3, %v389_v16  ;;  %v412_v37 = vmul.f32 %v400_v3, %v388_v32 }
 0x1eb   :  { %v1322_v35 = vadd.f32 %v424_v28, %v413_v26  ;;  %v1329_v39 = vadd.f32 %v424_v28, %v412_v37 }
 0x1ec   :  { %v362_v63 = vpop.f32.mrf.mxu0  ;;  %v381_v0 = vpop.f32.mrf.mxu1 }
 0x1ed   :  { %v363_v1 = vadd.f32 %v362_v63, %v326_v46  ;;  %v382_v2 = vadd.f32 %v381_v0, %v326_v46  ;;  %v453_v46 = vmul.f32 %v1114_v41, %v452_v43 }
 0x1ef   :  { %v390_v4 = vmax.f32 %v363_v1, 0.0  ;;  %v391_v5 = vmax.f32 %v382_v2, 0.0 }
 0x1f1   :  { %v414_v7 = vmul.f32 %v404_v52, %v390_v4  ;;  %v415_v11 = vmul.f32 %v404_v52, %v391_v5 }
 0x1f3   :  { %v1312_v12 = vadd.f32 %v428_v62, %v415_v11  ;;  %v1314_v15 = vadd.f32 %v428_v62, %v414_v7  ;;  %v1035_v7 = vld [vmem:[%s1436_s4] sm:$0xff]  ;;  %v1036_v11 = vld [vmem:[%s1436_s4 + $0x8] sm:$0xff] }
 0x1f4   :  { %v364_v18 = vpop.f32.mrf.mxu0  ;;  %v383_v19 = vpop.f32.mrf.mxu1 }
 0x1f5   :  { %v365_v20 = vadd.f32 %v364_v18, %v330_v49  ;;  %v384_v21 = vadd.f32 %v383_v19, %v330_v49  ;;  %465 = vadd.xlane.f32.xlu2 %v1312_v12  ;;  %446 = vadd.xlane.f32.xlu0 %v1314_v15  ;;  %v1165_v18 = vmov 7  }
 0x1f7   :  { %v392_v24 = vmax.f32 %v365_v20, 0.0  ;;  %v393_v25 = vmax.f32 %v384_v21, 0.0 }
 0x1f9   :  { %v416_v29 = vmul.f32 %v408_v48, %v392_v24  ;;  %v417_v30 = vmul.f32 %v408_v48, %v393_v25  ;;  %v454_v48 = vadd.f32 %v1114_v41, %v453_v46 }
 0x1fb   :  { %v1318_v33 = vadd.f32 %v432_v27, %v417_v30  ;;  %v1320_v34 = vadd.f32 %v432_v27, %v416_v29  ;;  %v456_v50 = vsel %vm455_vm1, %v1114_v41, %v454_v48 }
 0x1fd   :  { %467 = vadd.xlane.f32.xlu2 %v1318_v33  ;;  %448 = vadd.xlane.f32.xlu1 %v1320_v34 }
 0x1fe   :  { %463 = vadd.xlane.f32.xlu0 %v1322_v35 }
 0x205   :  { %461 = vadd.xlane.f32.xlu2 %v1327_v38  ;;  %444 = vadd.xlane.f32.xlu1 %v1329_v39 }
 0x212   :  { %481 = vperm.xlu0 %1101, %v1244_v8  }
 0x21a   :  { %1107 = vset.pattern.permute.xlu0 %v1157_v10 }
 0x21d   :  { %493 = vperm.xlu2 %1100, %v1263_v14  }
 0x21e   :  { %489 = vperm.xlu1 %1099, %v1249_v9  }
 0x225   :  { %1102 = vset.pattern.permute.xlu2 %v1165_v18 }
 0x226   :  { %485 = vperm.xlu1 %1099, %v1258_v13   ;;  %546 = vperm.xlu2 %1102, %v1249_v9  }
 0x22e   :  { %1103 = vset.pattern.permute.xlu1 %v1165_v18  ;;  %538 = vperm.xlu2 %1102, %v1244_v8   ;;  %v1037_v8 = vld [vmem:[%s1437_s5] sm:$0xff]  ;;  %s1168_s5 = smov 4  }
 0x22f   :  { %550 = vperm.xlu1 %1103, %v1263_v14  }
 0x236   :  { %1105 = vset.pattern.permute.xlu2 %v1157_v10 }
 0x237   :  { %542 = vperm.xlu1 %1103, %v1258_v13  }
 0x23f   :  { %1104 = vset.pattern.permute.xlu1 %v1157_v10 }
 0x258   :  { %v443_v45 = vpop.xlane.xlu0 %442 }
 0x259   :  { %v457_v0 = vmul.f32 %v456_v50, %v443_v45 }
 0x268   :  { %v466_v47 = vpop.xlane.xlu2 %465  ;;  %v447_v49 = vpop.xlane.xlu0 %446 }
 0x269   :  { %v471_v51 = vmul.f32 %v466_v47, %v456_v50  ;;  %v459_v52 = vmul.f32 %v456_v50, %v447_v49 }
 0x26b   :  { %v476_v57 = vsel %vm473_vm2, %v459_v52, %v471_v51 }
 0x270   :  { %v468_v53 = vpop.xlane.xlu2 %467  ;;  %v449_v54 = vpop.xlane.xlu1 %448 }
 0x271   :  { %v472_v55 = vmul.f32 %v468_v53, %v456_v50  ;;  %v460_v56 = vmul.f32 %v456_v50, %v449_v54  ;;  %v464_v61 = vpop.xlane.xlu0 %463 }
 0x272   :  { %v470_v1 = vmul.f32 %v464_v61, %v456_v50 }
 0x273   :  { %v477_v58 = vsel %vm473_vm2, %v460_v56, %v472_v55 }
 0x274   :  { %v479_v60 = vpack.c.bf16 %v477_v58, %v476_v57 }
 0x276   :  { %518 = vmatpush.bf16.msra.mxu2 %v479_v60 }
 0x278   :  { %v462_v62 = vpop.xlane.xlu2 %461  ;;  %v445_v63 = vpop.xlane.xlu1 %444 }
 0x279   :  { %v469_v2 = vmul.f32 %v462_v62, %v456_v50  ;;  %v458_v3 = vmul.f32 %v456_v50, %v445_v63 }
 0x27b   :  { %v474_v4 = vsel %vm473_vm2, %v457_v0, %v469_v2  ;;  %v475_v5 = vsel %vm473_vm2, %v458_v3, %v470_v1 }
 0x27c   :  { %v478_v6 = vpack.c.bf16 %v475_v5, %v474_v4 }
 0x27e   :  { %519 = vmatpush.bf16.msra.mxu2 %v478_v6 }
 0x280   :  { %v494_v23 = vpop.permute.xlu2 %493 }
 0x281   :  { %989 = vmatmul.msk.bf16.vlgmr.msra.gmra.mxu2 %vm117_vm0, %v1035_v7 }
 0x284   :  { %v482_v25 = vpop.permute.xlu0 %481 }
 0x288   :  { %v547_v37 = vpop.permute.xlu2 %546 }
 0x290   :  { %v490_v20 = vpop.permute.xlu1 %489  ;;  %v539_v41 = vpop.permute.xlu2 %538 }
 0x291   :  { %990 = vmatmul.msk.bf16.gmra.mxu2 %vm117_vm0, %v1036_v11 }
 0x298   :  { %v486_v22 = vpop.permute.xlu1 %485 }
 0x2a1   :  { %v551_v40 = vpop.permute.xlu1 %550 }
 0x2a9   :  { %v543_v45 = vpop.permute.xlu1 %542 }
 0x304   :  { %v521_v16 = vpop.f32.mrf.mxu2 }
 0x305   :  { %v522_v14 = vadd.f32 %v521_v16, %v482_v25 }
 0x307   :  { %v531_v32 = vmax.f32 %v522_v14, 0.0 }
 0x30c   :  { %v523_v19 = vpop.f32.mrf.mxu2 }
 0x30d   :  { %v524_v27 = vadd.f32 %v523_v19, %v486_v22 }
 0x30f   :  { %v532_v30 = vmax.f32 %v524_v27, 0.0 }
 0x311   :  { %v535_v13 = vpack.c.bf16 %v532_v30, %v531_v32 }
 0x314   :  { %v526_v21 = vpop.f32.mrf.mxu2 }
 0x315   :  { %v527_v24 = vadd.f32 %v526_v21, %v490_v20 }
 0x317   :  { %v533_v29 = vmax.f32 %v527_v24, 0.0 }
 0x31c   :  { %v528_v26 = vpop.f32.mrf.mxu2 }
 0x31d   :  { %v529_v28 = vadd.f32 %v528_v26, %v494_v23 }
 0x31f   :  { %v534_v9 = vmax.f32 %v529_v28, 0.0 }
 0x321   :  { %v536_v31 = vpack.c.bf16 %v534_v9, %v533_v29 }
 0x323   :  { %575 = vmatpush.bf16.msra.mxu3 %v536_v31 }
 0x327   :  { %576 = vmatpush.bf16.msra.mxu3 %v535_v13 }
 0x32a   :  { %999 = vmatmul.msk.bf16.vlgmr.msra.gmra.mxu3 %vm117_vm0, %v1037_v8 }
 0x33a   :  { %1000 = vmatmul.msk.bf16.gmra.mxu3 %vm117_vm0, %v1038_v36 }
 0x3ad   :  { %v578_v42 = vpop.f32.mrf.mxu3 }
 0x3ae   :  { %v579_v43 = vadd.f32 %v578_v42, %v539_v41 }
 0x3b0   :  { %v1001_v44 = vmul.f32 -1.442695, %v579_v43 }
 0x3b2   :  { %1115 = vpow2.f32 %v1001_v44 }
 0x3b5   :  { %v580_v46 = vpop.f32.mrf.mxu3 }
 0x3b6   :  { %v581_v47 = vadd.f32 %v580_v46, %v543_v45 }
 0x3b8   :  { %v1116_v48 = vpop.eup %1115  ;;  %v1002_v49 = vmul.f32 -1.442695, %v581_v47 }
 0x3b9   :  { %v600_v50 = vadd.f32 1.0, %v1116_v48 }
 0x3ba   :  { %1117 = vpow2.f32 %v1002_v49  ;;  %v62_v49 = vld [vmem:[%s1440_s8] sm:$0xff] }
 0x3bb   :  { %1119 = vrcp.f32 %v600_v50  ;;  %v615_v61 = vand.u32 2147483648, %v600_v50  ;;  %v613_v0 = vand.u32 2147483647, %v600_v50  ;;  %vm609_vm4 = vweird.f32 %v600_v50 }
 0x3bd   :  { %v583_v51 = vpop.f32.mrf.mxu3  ;;  %v616_v5 = vor.u32 1.1754944e-38, %v615_v61  ;;  %vm614_vm6 = vcmp.eq.f32.partialorder %v613_v0, 8.507059e+37 }
 0x3be   :  { %v584_v52 = vadd.f32 %v583_v51, %v547_v37  ;;  %v69_v51 = vld [vmem:[%s1440_s8 + $0x38] sm:$0xff] }
 0x3c0   :  { %v1118_v53 = vpop.eup %1117  ;;  %v1003_v54 = vmul.f32 -1.442695, %v584_v52 }
 0x3c1   :  { %v1120_v55 = vpop.eup %1119  ;;  %v1364_v57 = vadd.f32 1.0, %v1118_v53 }
 0x3c2   :  { %1121 = vpow2.f32 %v1003_v54  ;;  %v605_v56 = vmul.f32 %v1120_v55, %v600_v50  ;;  %vm610_vm3 = vweird.f32 %v1120_v55  ;;  %v64_v50 = vld [vmem:[%s1440_s8 + $0x10] sm:$0xff] }
 0x3c3   :  { %1123 = vrcp.f32 %v1364_v57  ;;  %vm611_vm5 = vmor %vm609_vm4, %vm610_vm3  ;;  %vm624_vm13 = vweird.f32 %v1364_v57  ;;  %v628_v41 = vand.u32 2147483647, %v1364_v57 }
 0x3c4   :  { %v606_v58 = vsub.f32 1.0, %v605_v56 }
 0x3c5   :  { %v585_v60 = vpop.f32.mrf.mxu3  ;;  %vm629_vm3 = vcmp.eq.f32.partialorder %v628_v41, 8.507059e+37 }
 0x3c6   :  { %v586_v62 = vadd.f32 %v585_v60, %v551_v40  ;;  %v607_v63 = vmul.f32 %v1120_v55, %v606_v58  ;;  %v630_v40 = vand.u32 2147483648, %v1364_v57  ;;  %v63_v58 = vld [vmem:[%s1440_s8 + $0x8] sm:$0xff] }
 0x3c8   :  { %v1122_v1 = vpop.eup %1121  ;;  %v1004_v2 = vmul.f32 -1.442695, %v586_v62  ;;  %v608_v3 = vadd.f32 %v1120_v55, %v607_v63  ;;  %v631_v46 = vor.u32 1.1754944e-38, %v630_v40 }
 0x3c9   :  { %v602_v4 = vadd.f32 1.0, %v1122_v1  ;;  %v1124_v11 = vpop.eup %1123 }
 0x3ca   :  { %1125 = vpow2.f32 %v1004_v2  ;;  %v612_v6 = vsel %vm611_vm5, %v1120_v55, %v608_v3  ;;  %v620_v20 = vmul.f32 %v1124_v11, %v1364_v57  ;;  %vm625_vm11 = vweird.f32 %v1124_v11  ;;  %v1039_v3 = vld [vmem:[%s1438_s6] sm:$0xff] }
 0x3cb   :  { %1127 = vrcp.f32 %v602_v4  ;;  %v617_v7 = vsel %vm614_vm6, %v616_v5, %v612_v6  ;;  %v645_v23 = vand.u32 2147483648, %v602_v4  ;;  %v643_v26 = vand.u32 2147483647, %v602_v4  ;;  %vm626_vm15 = vmor %vm624_vm13, %vm625_vm11  ;;  %v1041_v6 = vld [vmem:[%s1438_s6 + $0x10] sm:$0xff] }
 0x3cc   :  { %666 = vperm.xlu1 %1104, %v617_v7   ;;  %v621_v24 = vsub.f32 1.0, %v620_v20  ;;  %vm639_vm8 = vweird.f32 %v602_v4 }
 0x3cd   :  { %v646_v14 = vor.u32 1.1754944e-38, %v645_v23  ;;  %vm644_vm10 = vcmp.eq.f32.partialorder %v643_v26, 8.507059e+37 }
 0x3ce   :  { %v622_v29 = vmul.f32 %v1124_v11, %v621_v24 }
 0x3d0   :  { %v1126_v16 = vpop.eup %1125  ;;  %v623_v8 = vadd.f32 %v1124_v11, %v622_v29 }
 0x3d1   :  { %v1128_v18 = vpop.eup %1127  ;;  %v603_v19 = vadd.f32 1.0, %v1126_v16 }
 0x3d2   :  { %v635_v21 = vmul.f32 %v1128_v18, %v602_v4  ;;  %vm640_vm7 = vweird.f32 %v1128_v18  ;;  %v627_v44 = vsel %vm626_vm15, %v1124_v11, %v623_v8 }
 0x3d3   :  { %1129 = vrcp.f32 %v603_v19  ;;  %vm641_vm9 = vmor %vm639_vm8, %vm640_vm7  ;;  %v660_v13 = vand.u32 2147483648, %v603_v19  ;;  %v658_v37 = vand.u32 2147483647, %v603_v19  ;;  %vm654_vm14 = vweird.f32 %v603_v19 }
 0x3d4   :  { %1106 = vset.pattern.permute.xlu1 %v1158_v17  ;;  %v636_v22 = vsub.f32 1.0, %v635_v21  ;;  %v632_v48 = vsel %vm629_vm3, %v631_v46, %v627_v44 }
 0x3d5   :  { %v661_v43 = vor.u32 1.1754944e-38, %v660_v13  ;;  %vm659_vm2 = vcmp.eq.f32.partialorder %v658_v37, 8.507059e+37 }
 0x3d6   :  { %v637_v25 = vmul.f32 %v1128_v18, %v636_v22 }
 0x3d8   :  { %v638_v27 = vadd.f32 %v1128_v18, %v637_v25 }
 0x3d9   :  { %v1130_v28 = vpop.eup %1129 }
 0x3da   :  { %v642_v9 = vsel %vm641_vm9, %v1128_v18, %v638_v27  ;;  %v650_v30 = vmul.f32 %v1130_v28, %v603_v19  ;;  %vm655_vm12 = vweird.f32 %v1130_v28 }
 0x3db   :  { %v647_v31 = vsel %vm644_vm10, %v646_v14, %v642_v9  ;;  %vm656_vm1 = vmor %vm654_vm14, %vm655_vm12 }
 0x3dc   :  { %676 = vperm.xlu2 %1105, %v647_v31   ;;  %693 = vperm.xlu1 %1106, %v647_v31   ;;  %v651_v32 = vsub.f32 1.0, %v650_v30 }
 0x3de   :  { %v652_v36 = vmul.f32 %v1130_v28, %v651_v32 }
 0x3e0   :  { %v653_v42 = vadd.f32 %v1130_v28, %v652_v36 }
 0x3e2   :  { %v657_v45 = vsel %vm656_vm1, %v1130_v28, %v653_v42 }
 0x3e3   :  { %v662_v47 = vsel %vm659_vm2, %v661_v43, %v657_v45 }
 0x3e4   :  { %681 = vperm.xlu0 %1107, %v662_v47   ;;  %1108 = vset.pattern.permute.xlu2 %v1158_v17 }
 0x3e5   :  { %689 = vperm.xlu1 %1106, %v632_v48   ;;  %697 = vperm.xlu2 %1108, %v662_v47  }
 0x3ec   :  { %1110 = vset.pattern.permute.xlu0 %v1158_v17  ;;  %v67_v17 = vld [vmem:[%s1440_s8 + $0x28] sm:$0xff] }
 0x3ed   :  { %1109 = vset.pattern.permute.xlu2 %v1157_v10  ;;  %685 = vperm.xlu0 %1110, %v617_v7   ;;  %v1042_v7 = vld [vmem:[%s1438_s6 + $0x18] sm:$0xff] }
 0x3ee   :  { %671 = vperm.xlu2 %1109, %v632_v48   ;;  %1111 = vset.pattern.permute.xlu1 %v1157_v10 }
 0x3ef   :  { %719 = vperm.xlu1 %1111, %v63_v58  }
 0x3f5   :  { %1112 = vset.pattern.permute.xlu0 %v1157_v10 }
 0x3f6   :  { %714 = vperm.xlu2 %1109, %v62_v49  }
 0x3fe   :  { %724 = vperm.xlu2 %1109, %v64_v50  }
 0x406   :  { %739 = vperm.xlu2 %1109, %v67_v17  }
 0x40e   :  { %749 = vperm.xlu2 %1109, %v69_v51  }
 0x436   :  { %v677_v52 = vpop.permute.xlu2 %676 }
 0x437   :  { %v704_v62 = vmul.f32 %v677_v52, %v1314_v15 }
 0x43e   :  { %v667_v53 = vpop.permute.xlu1 %666 }
 0x43f   :  { %v698_v54 = vpop.permute.xlu2 %697 }
 0x440   :  { %v707_v55 = vmul.f32 %v698_v54, %v1318_v33  ;;  %v700_v33 = vmul.f32 %v667_v53, %v1309_v59  ;;  %v65_v59 = vld [vmem:[%s1440_s8 + $0x18] sm:$0xff] }
 0x441   :  { %729 = vperm.xlu0 %1112, %v65_v59  }
 0x448   :  { %v672_v60 = vpop.permute.xlu2 %671 }
 0x449   :  { %v702_v0 = vmul.f32 %v672_v60, %v1329_v39  ;;  %v1040_v39 = vld [vmem:[%s1438_s6 + $0x8] sm:$0xff]  ;;  %s1166_s6 = smov [#allocation2]  }
 0x44b   :  { %v708_v2 = vpack.c.bf16 %v702_v0, %v700_v33 }
 0x44e   :  { %v694_v10 = vpop.permute.xlu1 %693 }
 0x44f   :  { %v705_v56 = vmul.f32 %v694_v10, %v1312_v12 }
 0x450   :  { %v715_v16 = vpop.permute.xlu2 %714 }
 0x451   :  { %v711_v57 = vpack.c.bf16 %v707_v55, %v705_v56 }
 0x453   :  { %819 = vmatpush.bf16.msrb.mxu1 %v711_v57 }
 0x456   :  { %v682_v61 = vpop.permute.xlu0 %681 }
 0x457   :  { %v706_v63 = vmul.f32 %v682_v61, %v1320_v34  ;;  %v690_v12 = vpop.permute.xlu1 %689 }
 0x458   :  { %v703_v5 = vmul.f32 %v690_v12, %v1322_v35  ;;  %v66_v35 = vld [vmem:[%s1440_s8 + $0x20] sm:$0xff]  ;;  %v725_v13 = vpop.permute.xlu2 %724 }
 0x459   :  { %v710_v1 = vpack.c.bf16 %v706_v63, %v704_v62  ;;  %734 = vperm.xlu1 %1111, %v66_v35  }
 0x45b   :  { %790 = vmatpush.bf16.msrb.mxu0 %v710_v1 }
 0x45f   :  { %v686_v4 = vpop.permute.xlu0 %685  ;;  %791 = vmatpush.bf16.msrb.mxu0 %v708_v2 }
 0x460   :  { %v701_v15 = vmul.f32 %v686_v4, %v1327_v38  ;;  %v68_v38 = vld [vmem:[%s1440_s8 + $0x30] sm:$0xff]  ;;  %v740_v60 = vpop.permute.xlu2 %739  ;;  %s911_s8 = sshll.u32 %s1166_s6, 4  ;;  %s912_s8 = int_to_ptr.vmem [resolvable:$true] %s911_s8 }
 0x461   :  { %744 = vperm.xlu1 %1111, %v68_v38   ;;  %v720_v21 = vpop.permute.xlu1 %719 }
 0x462   :  { %1021 = vmatmul.msk.bf16.vlgmr.msrb.gmra.mxu0 %vm117_vm0, %v1039_v3  ;;  %v709_v34 = vpack.c.bf16 %v703_v5, %v701_v15 }
 0x464   :  { %820 = vmatpush.bf16.msrb.mxu1 %v709_v34 }
 0x467   :  { %1025 = vmatmul.msk.bf16.vlgmr.msrb.gmra.mxu1 %vm117_vm0, %v1039_v3 }
 0x472   :  { %1022 = vmatmul.msk.bf16.gmra.mxu0 %vm117_vm0, %v1040_v39 }
 0x477   :  { %1026 = vmatmul.msk.bf16.gmra.mxu1 %vm117_vm0, %v1040_v39 }
 0x482   :  { %1023 = vmatmul.msk.bf16.gmra.mxu0 %vm117_vm0, %v1041_v6 }
 0x487   :  { %1027 = vmatmul.msk.bf16.gmra.mxu1 %vm117_vm0, %v1041_v6  ;;  %v750_v6 = vpop.permute.xlu2 %749 }
 0x492   :  { %1024 = vmatmul.msk.bf16.gmra.mxu0 %vm117_vm0, %v1042_v7 }
 0x497   :  { %1028 = vmatmul.msk.bf16.gmra.mxu1 %vm117_vm0, %v1042_v7 }
 0x4b3   :  { %v730_v41 = vpop.permute.xlu0 %729 }
 0x4cb   :  { %v735_v51 = vpop.permute.xlu1 %734 }
 0x4d3   :  { %v745_v34 = vpop.permute.xlu1 %744 }
 0x4df   :  { %v793_v11 = vpop.f32.mrf.mxu0 }
 0x4e0   :  { %v794_v18 = vadd.f32 %v793_v11, %v715_v16 }
 0x4e2   :  { %v842_v22 = vmax.f32 %v794_v18, 0.0 }
 0x4e4   :  { %v822_v19 = vpop.f32.mrf.mxu1 }
 0x4e5   :  { %v823_v20 = vadd.f32 %v822_v19, %v715_v16 }
 0x4e7   :  { %v843_v23 = vmax.f32 %v823_v20, 0.0  ;;  %v795_v24 = vpop.f32.mrf.mxu0 }
 0x4e8   :  { %v796_v25 = vadd.f32 %v795_v24, %v720_v21 }
 0x4e9   :  { %v858_v26 = vpack.c.bf16 %v843_v23, %v842_v22 }
 0x4ea   :  { %v844_v27 = vmax.f32 %v796_v25, 0.0 }
 0x4eb   :  { %v882_v28 = vrot.slane %v858_v26, 4 }
 0x4ec   :  { %v1050_v14 = vpack.c.bf16 %v844_v27, %v842_v22  ;;  %v824_v29 = vpop.f32.mrf.mxu1 }
 0x4ed   :  { %899 = vst [vmem:[#allocation2 + $0x20] sm:$0xf] %v882_v28  ;;  %v825_v9 = vadd.f32 %v824_v29, %v720_v21 }
 0x4ee   :  { %1051 = vst [vmem:[#allocation2] sm:$0xff] %v1050_v14  }
 0x4ef   :  { %v845_v30 = vmax.f32 %v825_v9, 0.0  ;;  %v798_v31 = vpop.f32.mrf.mxu0 }
 0x4f0   :  { %v799_v36 = vadd.f32 %v798_v31, %v725_v13 }
 0x4f1   :  { %v859_v32 = vpack.c.bf16 %v845_v30, %v844_v27 }
 0x4f2   :  { %v846_v42 = vmax.f32 %v799_v36, 0.0 }
 0x4f3   :  { %v883_v8 = vrot.slane %v859_v32, 4 }
 0x4f4   :  { %v827_v37 = vpop.f32.mrf.mxu1 }
 0x4f5   :  { %900 = vst [vmem:[#allocation2 + $0x24] sm:$0xf] %v883_v8  ;;  %v828_v40 = vadd.f32 %v827_v37, %v725_v13 }
 0x4f7   :  { %v847_v43 = vmax.f32 %v828_v40, 0.0  ;;  %v800_v44 = vpop.f32.mrf.mxu0 }
 0x4f8   :  { %v801_v45 = vadd.f32 %v800_v44, %v730_v41 }
 0x4f9   :  { %v860_v46 = vpack.c.bf16 %v847_v43, %v846_v42 }
 0x4fa   :  { %v848_v47 = vmax.f32 %v801_v45, 0.0 }
 0x4fb   :  { %v884_v48 = vrot.slane %v860_v46, 4 }
 0x4fc   :  { %v1055_v49 = vpack.c.bf16 %v848_v47, %v846_v42  ;;  %v829_v50 = vpop.f32.mrf.mxu1 }
 0x4fd   :  { %901 = vst [vmem:[#allocation2 + $0x28] sm:$0xf] %v884_v48  ;;  %v830_v17 = vadd.f32 %v829_v50, %v730_v41 }
 0x4fe   :  { %1067 = vst [vmem:[#allocation2 + $0x8] sm:$0xff] %v1055_v49  }
 0x4ff   :  { %v849_v52 = vmax.f32 %v830_v17, 0.0  ;;  %v803_v53 = vpop.f32.mrf.mxu0 }
 0x500   :  { %v804_v10 = vadd.f32 %v803_v53, %v735_v51 }
 0x501   :  { %v861_v54 = vpack.c.bf16 %v849_v52, %v848_v47 }
 0x502   :  { %v850_v58 = vmax.f32 %v804_v10, 0.0 }
 0x503   :  { %v885_v55 = vrot.slane %v861_v54, 4 }
 0x504   :  { %v832_v56 = vpop.f32.mrf.mxu1 }
 0x505   :  { %902 = vst [vmem:[#allocation2 + $0x2c] sm:$0xf] %v885_v55  ;;  %v833_v57 = vadd.f32 %v832_v56, %v735_v51 }
 0x507   :  { %v805_v61 = vpop.f32.mrf.mxu0  ;;  %v851_v62 = vmax.f32 %v833_v57, 0.0 }
 0x508   :  { %v806_v63 = vadd.f32 %v805_v61, %v740_v60 }
 0x509   :  { %v862_v0 = vpack.c.bf16 %v851_v62, %v850_v58 }
 0x50a   :  { %v852_v1 = vmax.f32 %v806_v63, 0.0 }
 0x50b   :  { %v886_v33 = vrot.slane %v862_v0, 4 }
 0x50c   :  { %v1060_v12 = vpack.c.bf16 %v852_v1, %v850_v58  ;;  %v834_v2 = vpop.f32.mrf.mxu1 }
 0x50d   :  { %903 = vst [vmem:[#allocation2 + $0x30] sm:$0xf] %v886_v33  ;;  %v835_v3 = vadd.f32 %v834_v2, %v740_v60 }
 0x50e   :  { %1068 = vst [vmem:[#allocation2 + $0x10] sm:$0xff] %v1060_v12  }
 0x50f   :  { %v853_v4 = vmax.f32 %v835_v3, 0.0  ;;  %v808_v5 = vpop.f32.mrf.mxu0 }
 0x510   :  { %v809_v39 = vadd.f32 %v808_v5, %v745_v34 }
 0x511   :  { %v863_v15 = vpack.c.bf16 %v853_v4, %v852_v1 }
 0x512   :  { %v854_v11 = vmax.f32 %v809_v39, 0.0 }
 0x513   :  { %v887_v59 = vrot.slane %v863_v15, 4 }
 0x514   :  { %v837_v35 = vpop.f32.mrf.mxu1 }
 0x515   :  { %904 = vst [vmem:[#allocation2 + $0x34] sm:$0xf] %v887_v59  ;;  %v838_v38 = vadd.f32 %v837_v35, %v745_v34 }
 0x517   :  { %v810_v7 = vpop.f32.mrf.mxu0  ;;  %v855_v16 = vmax.f32 %v838_v38, 0.0 }
 0x518   :  { %v811_v18 = vadd.f32 %v810_v7, %v750_v6 }
 0x519   :  { %v864_v19 = vpack.c.bf16 %v855_v16, %v854_v11 }
 0x51a   :  { %v856_v20 = vmax.f32 %v811_v18, 0.0 }
 0x51b   :  { %v888_v21 = vrot.slane %v864_v19, 4 }
 0x51c   :  { %v1065_v22 = vpack.c.bf16 %v856_v20, %v854_v11  ;;  %v839_v23 = vpop.f32.mrf.mxu1 }
 0x51d   :  { %905 = vst [vmem:[#allocation2 + $0x38] sm:$0xf] %v888_v21  ;;  %v840_v24 = vadd.f32 %v839_v23, %v750_v6 }
 0x51e   :  { %1069 = vst [vmem:[#allocation2 + $0x18] sm:$0xff] %v1065_v22  }
 0x51f   :  { %v857_v25 = vmax.f32 %v840_v24, 0.0 }
 0x521   :  { %v865_v26 = vpack.c.bf16 %v857_v25, %v856_v20 }
 0x523   :  { %v889_v27 = vrot.slane %v865_v26, 4 }
 0x525   :  { %906 = vst [vmem:[#allocation2 + $0x3c] sm:$0xf] %v889_v27 }
 0x526   :  { %919 = dma.vmem_to_hbm [thread:$0]  %s912_s8, 1024, %s914_s16, [#allocation3], %s1167_s17, %s1167_s17, %s1168_s5  }
 0x527   :  { %1155 = dma.done.wait [#allocation3], 1024  }
 0x528   :  { %1156 = vsyncadd [#allocation3], 4294966272 }
 0x529   :  { %924 = vsyncpa [#allocation3], 1 }

</bundles_post_ra>
